<compile_context>
chip_gen: v7x
topology: tpu7x:2x2x1
jax: 0.10.0
libtpu: 0.0.40
codegen_flags: <defaults>
</compile_context>

<pallas_src>
import jax
import jax.numpy as jnp
from jax.experimental import pallas as pl
from jax.experimental.pallas import tpu as pltpu

LANE = 128       # TPU lane width: hidden feature dims are padded to this in VMEM only

F_IN = 10        # AE_part1: Linear(10, 10)
F_H1 = 10
F_H2 = 5         # AE_part2: Linear(10, 5)
F_H3 = 10        # AE_part3: Linear(5, 10)
F_OUT = 1        # AE_part3: Linear(10, 1)
N_LAYERS = 4


def _ae_fused_kernel(x_ref, w_ref, b_ref, o_ref, xp_ref):
    """Fused Dummy_AE: 4 x (MXU matmul + bias + ReLU).

    x_ref : (TB, 10)  f32   unpadded HBM tile
    w_ref : (4, 128, 128) f32  zero-padded (in, out) weight stack (VMEM resident)
    b_ref : (4, 128)  f32   zero-padded bias stack (VMEM resident)
    o_ref : (TB, 1)   f32   output tile
    xp_ref: (TB, 128) f32   VMEM staging tile for the lane-padded input
    """
    # Lane-pad the 10-wide input inside VMEM. Zero-fill then overwrite lanes 0..9;
    # the zero fill runs on the store slots and hides under the MXU work. The
    # unconditional fill keeps the kernel correct under megacore grid sharding.
    xp_ref[...] = jnp.zeros_like(xp_ref)
    xp_ref[:, :F_IN] = x_ref[...]

    b = b_ref[...]                      # (4, 128)
    h = xp_ref[...]                     # (TB, 128); lanes >= 10 are exactly zero
    for l in range(N_LAYERS):
        # Zero padding propagates exactly: padded weight rows/cols and padded bias
        # lanes are zero, so ReLU(0 + 0) = 0 in every padded lane.
        h = jnp.maximum(
            jnp.dot(h, w_ref[l], preferred_element_type=jnp.float32)
            + b[l:l + 1, :],
            0.0)
    o_ref[...] = h[:, :F_OUT].astype(o_ref.dtype)


def init_params(key):
    """nn.Linear-style init U(-1/sqrt(fan_in), 1/sqrt(fan_in)), PyTorch (out, in) layout."""
    dims = [(F_IN, F_H1), (F_H1, F_H2), (F_H2, F_H3), (F_H3, F_OUT)]
    params = []
    for d_in, d_out in dims:
        key, kw, kb = jax.random.split(key, 3)
        bound = 1.0 / (d_in ** 0.5)
        w = jax.random.uniform(kw, (d_out, d_in), jnp.float32, -bound, bound)
        b = jax.random.uniform(kb, (d_out,), jnp.float32, -bound, bound)
        params.append((w, b))
    return params


def pack_params(params):
    """Pack PyTorch-layout (out,in) weights into one zero-padded (4,128,128) (in,out)
    stack and one (4,128) bias stack. Done once at init."""
    w_stack = jnp.zeros((N_LAYERS, LANE, LANE), jnp.float32)
    b_stack = jnp.zeros((N_LAYERS, LANE), jnp.float32)
    for l, (w, b) in enumerate(params):
        w_io = w.T  # (in, out)
        w_stack = w_stack.at[l, : w_io.shape[0], : w_io.shape[1]].set(w_io)
        b_stack = b_stack.at[l, : b.shape[0]].set(b)
    return w_stack, b_stack


def dummy_ae_forward(x, packed_params, *, batch_tile=2048):
    """Full Dummy_AE forward.  x: (B, 10) f32  ->  (B, 1) f32.

    The per-chunk RPC dispatch of the PyTorch module is pure orchestration, so the
    kernel processes the whole batch (result is identical to the chunked concat).
    """
    w_stack, b_stack = packed_params
    x = x.astype(jnp.float32)
    B = x.shape[0]

    if B <= batch_tile:
        # Small batch: gridless call -> zero per-step pipeline overhead,
        # full (unpadded) arrays mapped straight into VMEM.
        vmem = pl.BlockSpec(memory_space=pltpu.MemorySpace.VMEM)
        return pl.pallas_call(
            _ae_fused_kernel,
            out_shape=jax.ShapeDtypeStruct((B, F_OUT), jnp.float32),
            in_specs=[vmem, vmem, vmem],
            out_specs=vmem,
            scratch_shapes=[pltpu.VMEM((B, LANE), jnp.float32)],
        )(x, w_stack, b_stack)

    # Large batch: tile the batch axis with cdiv (no host-side pad; Pallas masks the
    # partial last block). Weights/biases stay VMEM-resident via constant index_map.
    # "parallel" lets the batch axis shard across v7x's two TensorCores.
    TB = batch_tile
    n_tiles = pl.cdiv(B, TB)
    return pl.pallas_call(
        _ae_fused_kernel,
        out_shape=jax.ShapeDtypeStruct((B, F_OUT), jnp.float32),
        grid=(n_tiles,),
        in_specs=[
            pl.BlockSpec((TB, F_IN), lambda i: (i, 0)),            # last dim == full dim
            pl.BlockSpec((N_LAYERS, LANE, LANE), lambda i: (0, 0, 0)),
            pl.BlockSpec((N_LAYERS, LANE), lambda i: (0, 0)),
        ],
        out_specs=pl.BlockSpec((TB, F_OUT), lambda i: (i, 0)),     # last dim == full dim
        scratch_shapes=[pltpu.VMEM((TB, LANE), jnp.float32)],
        compiler_params=pltpu.CompilerParams(
            dimension_semantics=("parallel",),
        ),
    )(x, w_stack, b_stack)


def reference_forward(x, params):
    h = x
    for w, b in params:
        h = jnp.maximum(h @ w.T + b, 0.0)
    return h


if __name__ == "__main__":
    # TODO(synk): torch.distributed.rpc remote/futures and threading.Lock are
    # host-side glue with no numerical effect and are not translated.
    key = jax.random.PRNGKey(0)
    k_x, k_p = jax.random.split(key)

    params = init_params(k_p)
    packed = pack_params(params)

    # Small batch -> gridless path.
    B = 8
    x = jax.random.normal(k_x, (B, F_IN), jnp.float32)
    out = dummy_ae_forward(x, packed)
    jax.block_until_ready(out)
    ref = reference_forward(x, params)
    assert out.shape == (B, F_OUT)
    assert jnp.allclose(out, ref, atol=1e-5, rtol=1e-5)

    # Larger batch -> batch-tiled "parallel" path (4 grid steps at default TB=2048).
    B2 = 8192
    x2 = jax.random.normal(k_x, (B2, F_IN), jnp.float32)
    out2 = dummy_ae_forward(x2, packed)
    jax.block_until_ready(out2)
    ref2 = reference_forward(x2, params)
    assert out2.shape == (B2, F_OUT)
    assert jnp.allclose(out2, ref2, atol=1e-5, rtol=1e-5)

    print("KERNEL_OK")
</pallas_src>

<mosaic_0001>
module attributes {stable_mosaic.version = 11 : i64} {
  func.func @_ae_fused_kernel(%arg0: memref<8x10xf32, #tpu.memory_space<vmem>>, %arg1: memref<4x128x128xf32, #tpu.memory_space<vmem>>, %arg2: memref<4x128xf32, #tpu.memory_space<vmem>>, %arg3: memref<8x1xf32, #tpu.memory_space<vmem>>, %arg4: memref<8x128xf32, #tpu.memory_space<vmem>>) attributes {dimension_semantics = [], scalar_prefetch = 0 : i64, scratch_operands = 1 : i64, tpu.core_type = #tpu.core_type<tc>} {
    %cst = arith.constant 0.000000e+00 : f32
    %0 = vector.broadcast %cst : f32 to vector<8x128xf32>
    %c0 = arith.constant 0 : index
    %c0_0 = arith.constant 0 : index
    %1 = vector.load %arg4[%c0, %c0_0] : memref<8x128xf32, #tpu.memory_space<vmem>>, vector<8x128xf32>
    tpu.vector_store %arg4[%c0, %c0_0], %0 {strides = array<i32>} : memref<8x128xf32, #tpu.memory_space<vmem>>, vector<8x128xf32>,
    %c0_1 = arith.constant 0 : index
    %c0_2 = arith.constant 0 : index
    %2 = vector.load %arg0[%c0_1, %c0_2] : memref<8x10xf32, #tpu.memory_space<vmem>>, vector<8x10xf32>
    %c0_3 = arith.constant 0 : index
    %c0_4 = arith.constant 0 : index
    %3 = vector.load %arg4[%c0_3, %c0_4] : memref<8x128xf32, #tpu.memory_space<vmem>>, vector<8x10xf32>
    tpu.vector_store %arg4[%c0_3, %c0_4], %2 {strides = array<i32>} : memref<8x128xf32, #tpu.memory_space<vmem>>, vector<8x10xf32>,
    %c0_5 = arith.constant 0 : index
    %c0_6 = arith.constant 0 : index
    %4 = vector.load %arg2[%c0_5, %c0_6] : memref<4x128xf32, #tpu.memory_space<vmem>>, vector<4x128xf32>
    %c0_7 = arith.constant 0 : index
    %c0_8 = arith.constant 0 : index
    %5 = vector.load %arg4[%c0_7, %c0_8] : memref<8x128xf32, #tpu.memory_space<vmem>>, vector<8x128xf32>
    %c0_9 = arith.constant 0 : index
    %c0_10 = arith.constant 0 : index
    %c0_11 = arith.constant 0 : index
    %6 = vector.load %arg1[%c0_9, %c0_10, %c0_11] : memref<4x128x128xf32, #tpu.memory_space<vmem>>, vector<1x128x128xf32>
    %7 = vector.shape_cast %6 : vector<1x128x128xf32> to vector<128x128xf32>
    %cst_12 = arith.constant dense<0.000000e+00> : vector<8x128xf32>
    %8 = tpu.matmul %5, %7, %cst_12 {dimension_numbers = #tpu.dot_dimension_numbers<[1], [0], [0], [1], [0, 0, 1, 1], [], []>} : vector<8x128xf32>, vector<128x128xf32>, vector<8x128xf32> -> vector<8x128xf32>
    %9 = vector.extract_strided_slice %4 {offsets = [0, 0], sizes = [1, 128], strides = [1, 1]} : vector<4x128xf32> to vector<1x128xf32>
    %10 = vector.broadcast %9 : vector<1x128xf32> to vector<8x128xf32>
    %11 = arith.addf %8, %10 : vector<8x128xf32>
    %cst_13 = arith.constant 0.000000e+00 : f32
    %12 = vector.broadcast %cst_13 : f32 to vector<8x128xf32>
    %13 = arith.maximumf %11, %12 : vector<8x128xf32>
    %c1 = arith.constant 1 : index
    %c0_14 = arith.constant 0 : index
    %c0_15 = arith.constant 0 : index
    %14 = vector.load %arg1[%c1, %c0_14, %c0_15] : memref<4x128x128xf32, #tpu.memory_space<vmem>>, vector<1x128x128xf32>
    %15 = vector.shape_cast %14 : vector<1x128x128xf32> to vector<128x128xf32>
    %cst_16 = arith.constant dense<0.000000e+00> : vector<8x128xf32>
    %16 = tpu.matmul %13, %15, %cst_16 {dimension_numbers = #tpu.dot_dimension_numbers<[1], [0], [0], [1], [0, 0, 1, 1], [], []>} : vector<8x128xf32>, vector<128x128xf32>, vector<8x128xf32> -> vector<8x128xf32>
    %17 = vector.extract_strided_slice %4 {offsets = [1, 0], sizes = [1, 128], strides = [1, 1]} : vector<4x128xf32> to vector<1x128xf32>
    %18 = vector.broadcast %17 : vector<1x128xf32> to vector<8x128xf32>
    %19 = arith.addf %16, %18 : vector<8x128xf32>
    %cst_17 = arith.constant 0.000000e+00 : f32
    %20 = vector.broadcast %cst_17 : f32 to vector<8x128xf32>
    %21 = arith.maximumf %19, %20 : vector<8x128xf32>
    %c2 = arith.constant 2 : index
    %c0_18 = arith.constant 0 : index
    %c0_19 = arith.constant 0 : index
    %22 = vector.load %arg1[%c2, %c0_18, %c0_19] : memref<4x128x128xf32, #tpu.memory_space<vmem>>, vector<1x128x128xf32>
    %23 = vector.shape_cast %22 : vector<1x128x128xf32> to vector<128x128xf32>
    %cst_20 = arith.constant dense<0.000000e+00> : vector<8x128xf32>
    %24 = tpu.matmul %21, %23, %cst_20 {dimension_numbers = #tpu.dot_dimension_numbers<[1], [0], [0], [1], [0, 0, 1, 1], [], []>} : vector<8x128xf32>, vector<128x128xf32>, vector<8x128xf32> -> vector<8x128xf32>
    %25 = vector.extract_strided_slice %4 {offsets = [2, 0], sizes = [1, 128], strides = [1, 1]} : vector<4x128xf32> to vector<1x128xf32>
    %26 = vector.broadcast %25 : vector<1x128xf32> to vector<8x128xf32>
    %27 = arith.addf %24, %26 : vector<8x128xf32>
    %cst_21 = arith.constant 0.000000e+00 : f32
    %28 = vector.broadcast %cst_21 : f32 to vector<8x128xf32>
    %29 = arith.maximumf %27, %28 : vector<8x128xf32>
    %c3 = arith.constant 3 : index
    %c0_22 = arith.constant 0 : index
    %c0_23 = arith.constant 0 : index
    %30 = vector.load %arg1[%c3, %c0_22, %c0_23] : memref<4x128x128xf32, #tpu.memory_space<vmem>>, vector<1x128x128xf32>
    %31 = vector.shape_cast %30 : vector<1x128x128xf32> to vector<128x128xf32>
    %cst_24 = arith.constant dense<0.000000e+00> : vector<8x128xf32>
    %32 = tpu.matmul %29, %31, %cst_24 {dimension_numbers = #tpu.dot_dimension_numbers<[1], [0], [0], [1], [0, 0, 1, 1], [], []>} : vector<8x128xf32>, vector<128x128xf32>, vector<8x128xf32> -> vector<8x128xf32>
    %33 = vector.extract_strided_slice %4 {offsets = [3, 0], sizes = [1, 128], strides = [1, 1]} : vector<4x128xf32> to vector<1x128xf32>
    %34 = vector.broadcast %33 : vector<1x128xf32> to vector<8x128xf32>
    %35 = arith.addf %32, %34 : vector<8x128xf32>
    %cst_25 = arith.constant 0.000000e+00 : f32
    %36 = vector.broadcast %cst_25 : f32 to vector<8x128xf32>
    %37 = arith.maximumf %35, %36 : vector<8x128xf32>
    %38 = vector.extract_strided_slice %37 {offsets = [0, 0], sizes = [8, 1], strides = [1, 1]} : vector<8x128xf32> to vector<8x1xf32>
    %c0_26 = arith.constant 0 : index
    %c0_27 = arith.constant 0 : index
    %39 = vector.load %arg3[%c0_26, %c0_27] : memref<8x1xf32, #tpu.memory_space<vmem>>, vector<8x1xf32>
    tpu.vector_store %arg3[%c0_26, %c0_27], %38 {strides = array<i32>} : memref<8x1xf32, #tpu.memory_space<vmem>>, vector<8x1xf32>,
    return
  }
}

</mosaic_0001>

<bundles_post_ra>
// kernel: tpu_custom_call.1
= control target key start
LH: loop header
LB: loop body
LE: loop exit
PB: predicated region body
PF: predicated region fallthrough
CT: control target
= control target key end

     0   :  { %8 = vsyncpa [#allocation4], 0  ;;  %s897_s0 = inlined_call_operand.hbm [shape: f32[8,10], index: 0, kind: input, shape index: {}]   ;;  %s898_s1 = inlined_call_operand.hbm [shape: f32[4,128,128], index: 1, kind: input, shape index: {}]   ;;  %s899_s2 = inlined_call_operand.vmem [shape: f32[4,128], index: 2, kind: input, shape index: {}]   ;;  %s900_s3 = inlined_call_operand.vmem [shape: f32[8,1], index: 3, kind: output, shape index: {}]  }
   0x1   :  { %9 = vsyncpa [#allocation6], 0  ;;  %s780_s12 = smov [#allocation3]   ;;  %s781_s14 = smov [#allocation5]  }
   0x2   :  { %s16_s13 = sshll.u32 %s780_s12, 4  ;;  %s25_s15 = sshll.u32 %s781_s14, 4  ;;  %s17_s13 = int_to_ptr.vmem [resolvable:$true] %s16_s13  ;;  %s807_s15 = int_to_ptr.vmem [resolvable:$true] %s25_s15 }
   0x3   :  { %s732_s18 = scalar_lea.hbm %s897_s0, 128 }
   0x4   :  { %p733_p0 = scmp.ne.s32.totalorder %s897_s0, %s732_s18  ;;  %p736_p1 = scmp.lt.u32.totalorder %s732_s18, %s897_s0 }
   0x6   :  { %p738_p2 = pnand %p736_p1, %p733_p0 }
   0x8   :  { %741 = shalt.err (!%p738_p2)
}
   0x9   :  { %s742_s23 = scalar_lea.vmem %s17_s13, 128  ;;  %p747_p4 = scmp.lt.s32.totalorder %s17_s13, %s17_s13 }
   0xa   :  { %p743_p3 = scmp.ne.s32.totalorder %s17_s13, %s742_s23  ;;  %p748_p5 = scmp.lt.s32.totalorder %s742_s23, %s742_s23 }
   0xc   :  { %p749_p6 = por %p748_p5, %p747_p4 }
   0xe   :  { %p750_p7 = pnand %p749_p6, %p743_p3 }
  0x10   :  { %753 = shalt.err (!%p750_p7)
}
  0x11   :  { %19 = dma.hbm_to_vmem [thread:$0]  %s897_s0, 128, %s17_s13, [#allocation4]  }
  0x12   :  { %s754_s28 = scalar_lea.hbm %s898_s1, 8192 }
  0x13   :  { %p755_p8 = scmp.ne.s32.totalorder %s898_s1, %s754_s28  ;;  %p758_p9 = scmp.lt.u32.totalorder %s754_s28, %s898_s1 }
  0x15   :  { %p760_p10 = pnand %p758_p9, %p755_p8 }
  0x17   :  { %763 = shalt.err (!%p760_p10)
}
  0x18   :  { %s764_s6 = scalar_lea.vmem %s807_s15, 8192  ;;  %p769_p12 = scmp.lt.s32.totalorder %s807_s15, %s807_s15 }
  0x19   :  { %p765_p11 = scmp.ne.s32.totalorder %s807_s15, %s764_s6  ;;  %p770_p13 = scmp.lt.s32.totalorder %s764_s6, %s764_s6 }
  0x1b   :  { %p771_p0 = por %p770_p13, %p769_p12 }
  0x1d   :  { %p772_p1 = pnand %p771_p0, %p765_p11 }
  0x1f   :  { %775 = shalt.err (!%p772_p1)
}
  0x20   :  { %s782_s0 = smov 128   ;;  %s783_s7 = smov 8  }
  0x21   :  { %31 = dma.hbm_to_vmem [thread:$0]  %s898_s1, 8192, %s807_s15, [#allocation6], %s782_s0, %s782_s0, %s783_s7  }
  0x22   :  { %776 = dma.done.wait [#allocation4], 128  }
  0x23   :  { %777 = vsyncadd [#allocation4], 4294967168 }
  0x24   :  { %778 = dma.done.wait [#allocation6], 8192  }
  0x25   :  { %779 = vsyncadd [#allocation6], 4294959104  ;;  %v784_v0 = vmov 0.0|0.0   ;;  %v785_v1 = vmov 0.0   ;;  %vm786_vm0 = vmmov 0   ;;  %v46_v2 = vld [vmem:[#allocation5] sm:$0xff] }
  0x26   :  { %629 = vmatprep.subr.bf16.mxu0 %v784_v0  ;;  %40 = vst [vmem:[#allocation2] sm:$0xff] %v785_v1  ;;  %521 = vmatprep.mubr.msk.f32.mxu0 %vm786_vm0, %v785_v1  ;;  %v47_v3 = vld [vmem:[#allocation5 + $0x8] sm:$0xff]  ;;  %v48_v4 = vld [vmem:[#allocation5 + $0x10] sm:$0xff]  ;;  %v49_v6 = vld [vmem:[#allocation5 + $0x18] sm:$0xff]  ;;  %vm42_vm1 = vcmask 80896   ;;  %vm413_vm2 = vcmask 7168  }
  0x27   :  { %653 = vmatprep.subr.bf16.mxu1 %v784_v0  ;;  %556 = vmatprep.mubr.msk.f32.mxu1 %vm786_vm0, %v785_v1  ;;  %v630_v5 = vpack.c.bf16 %v47_v3, %v46_v2  ;;  %v633_v7 = vpack.c.bf16 %v49_v6, %v48_v4  ;;  %v50_v8 = vld [vmem:[#allocation5 + $0x20] sm:$0xff]  ;;  %v51_v9 = vld [vmem:[#allocation5 + $0x28] sm:$0xff]  ;;  %v41_v10 = vld [vmem:[#allocation3] sm:$0xff] }
  0x28   :  { %v138_v11 = vld [vmem:[#allocation5 + $0x80] sm:$0xff]  ;;  %43 = vst.msk [vmem:[#allocation2] sm:$0xff] %vm42_vm1, %v41_v10  ;;  %v139_v12 = vld [vmem:[#allocation5 + $0x88] sm:$0xff]  ;;  %v140_v13 = vld [vmem:[#allocation5 + $0x90] sm:$0xff]  ;;  %v636_v15 = vpack.c.bf16 %v51_v9, %v50_v8 }
  0x29   :  { %631 = vmatpush3.bf16.msra.mxu0 %v630_v5  ;;  %v141_v14 = vld [vmem:[#allocation5 + $0x98] sm:$0xff]  ;;  %v654_v16 = vpack.c.bf16 %v139_v12, %v138_v11  ;;  %v52_v17 = vld [vmem:[#allocation5 + $0x30] sm:$0xff]  ;;  %v142_v20 = vld [vmem:[#allocation5 + $0xa0] sm:$0xff]  ;;  %v62_v11 = vlaneseq }
  0x2a   :  { %632 = vmatprep.subr.bf16.mxu0 %v784_v0  ;;  %v53_v18 = vld [vmem:[#allocation5 + $0x38] sm:$0xff]  ;;  %v657_v19 = vpack.c.bf16 %v141_v14, %v140_v13  ;;  %v143_v21 = vld [vmem:[#allocation5 + $0xa8] sm:$0xff]  ;;  %v54_v23 = vld [vmem:[#allocation5 + $0x40] sm:$0xff] }
  0x2b   :  { %655 = vmatpush3.bf16.msra.mxu1 %v654_v16  ;;  %v639_v22 = vpack.c.bf16 %v53_v18, %v52_v17  ;;  %v55_v24 = vld [vmem:[#allocation5 + $0x48] sm:$0xff]  ;;  %v660_v25 = vpack.c.bf16 %v143_v21, %v142_v20  ;;  %v144_v26 = vld [vmem:[#allocation5 + $0xb0] sm:$0xff]  ;;  %v145_v27 = vld [vmem:[#allocation5 + $0xb8] sm:$0xff]  ;;  %v870_v12 = vshrl.u32 %v62_v11, 7 }
  0x2c   :  { %656 = vmatprep.subr.bf16.mxu1 %v784_v0  ;;  %v642_v28 = vpack.c.bf16 %v55_v24, %v54_v23  ;;  %v56_v29 = vld [vmem:[#allocation5 + $0x50] sm:$0xff]  ;;  %v57_v30 = vld [vmem:[#allocation5 + $0x58] sm:$0xff]  ;;  %v663_v31 = vpack.c.bf16 %v145_v27, %v144_v26  ;;  %v146_v32 = vld [vmem:[#allocation5 + $0xc0] sm:$0xff] }
  0x2d   :  { %634 = vmatpush3.bf16.msra.mxu0 %v633_v7  ;;  %v147_v33 = vld [vmem:[#allocation5 + $0xc8] sm:$0xff]  ;;  %v645_v34 = vpack.c.bf16 %v57_v30, %v56_v29  ;;  %v58_v35 = vld [vmem:[#allocation5 + $0x60] sm:$0xff]  ;;  %v148_v38 = vld [vmem:[#allocation5 + $0xd0] sm:$0xff]  ;;  %v64_v13 = vsub.s32 0, %v870_v12 }
  0x2e   :  { %635 = vmatprep.subr.bf16.mxu0 %v784_v0  ;;  %v59_v36 = vld [vmem:[#allocation5 + $0x68] sm:$0xff]  ;;  %v666_v37 = vpack.c.bf16 %v147_v33, %v146_v32  ;;  %v149_v39 = vld [vmem:[#allocation5 + $0xd8] sm:$0xff]  ;;  %v60_v41 = vld [vmem:[#allocation5 + $0x70] sm:$0xff] }
  0x2f   :  { %658 = vmatpush3.bf16.msra.mxu1 %v657_v19  ;;  %v648_v40 = vpack.c.bf16 %v59_v36, %v58_v35  ;;  %v61_v42 = vld [vmem:[#allocation5 + $0x78] sm:$0xff]  ;;  %v669_v43 = vpack.c.bf16 %v149_v39, %v148_v38  ;;  %v150_v44 = vld [vmem:[#allocation5 + $0xe0] sm:$0xff]  ;;  %v151_v45 = vld [vmem:[#allocation5 + $0xe8] sm:$0xff] }
  0x30   :  { %659 = vmatprep.subr.bf16.mxu1 %v784_v0  ;;  %v651_v46 = vpack.c.bf16 %v61_v42, %v60_v41  ;;  %v672_v47 = vpack.c.bf16 %v151_v45, %v150_v44  ;;  %v45_v48 = vld [vmem:[#allocation2] sm:$0xff]  ;;  %v153_v50 = vld [vmem:[#allocation5 + $0xf8] sm:$0xff]  ;;  %v230_v52 = vld [vmem:[#allocation5 + $0x100] sm:$0xff] }
  0x31   :  { %637 = vmatpush3.bf16.msra.mxu0 %v636_v15  ;;  %v152_v49 = vld [vmem:[#allocation5 + $0xf0] sm:$0xff]  ;;  %v231_v53 = vld [vmem:[#allocation5 + $0x108] sm:$0xff]  ;;  %v233_v56 = vld [vmem:[#allocation5 + $0x118] sm:$0xff] }
  0x32   :  { %638 = vmatprep.subr.bf16.mxu0 %v784_v0  ;;  %v675_v51 = vpack.c.bf16 %v153_v50, %v152_v49  ;;  %v232_v54 = vld [vmem:[#allocation5 + $0x110] sm:$0xff]  ;;  %v678_v55 = vpack.c.bf16 %v231_v53, %v230_v52  ;;  %v234_v58 = vld [vmem:[#allocation5 + $0x120] sm:$0xff]  ;;  %v235_v59 = vld [vmem:[#allocation5 + $0x128] sm:$0xff]  ;;  %v248_v52 = vsub.s32 2, %v870_v12 }
  0x33   :  { %661 = vmatpush3.bf16.msra.mxu1 %v660_v25  ;;  %v681_v57 = vpack.c.bf16 %v233_v56, %v232_v54  ;;  %v684_v60 = vpack.c.bf16 %v235_v59, %v234_v58  ;;  %v236_v61 = vld [vmem:[#allocation5 + $0x130] sm:$0xff]  ;;  %v237_v62 = vld [vmem:[#allocation5 + $0x138] sm:$0xff]  ;;  %v238_v2 = vld [vmem:[#allocation5 + $0x140] sm:$0xff] }
  0x34   :  { %662 = vmatprep.subr.bf16.mxu1 %v784_v0  ;;  %v687_v63 = vpack.c.bf16 %v237_v62, %v236_v61  ;;  %v239_v3 = vld [vmem:[#allocation5 + $0x148] sm:$0xff]  ;;  %v240_v5 = vld [vmem:[#allocation5 + $0x150] sm:$0xff]  ;;  %v241_v6 = vld [vmem:[#allocation5 + $0x158] sm:$0xff] }
  0x35   :  { %640 = vmatpush3.bf16.msra.mxu0 %v639_v22  ;;  %v690_v4 = vpack.c.bf16 %v239_v3, %v238_v2  ;;  %v693_v7 = vpack.c.bf16 %v241_v6, %v240_v5  ;;  %v242_v8 = vld [vmem:[#allocation5 + $0x160] sm:$0xff]  ;;  %v243_v9 = vld [vmem:[#allocation5 + $0x168] sm:$0xff]  ;;  %v244_v20 = vld [vmem:[#allocation5 + $0x170] sm:$0xff] }
  0x36   :  { %641 = vmatprep.subr.bf16.mxu0 %v784_v0  ;;  %v696_v10 = vpack.c.bf16 %v243_v9, %v242_v8  ;;  %v876_v14 = vld [vmem:[%s899_s2] sm:$0xf]  ;;  %v245_v21 = vld [vmem:[#allocation5 + $0x178] sm:$0xff]  ;;  %v322_v23 = vld [vmem:[#allocation5 + $0x180] sm:$0xff] }
  0x37   :  { %664 = vmatpush3.bf16.msra.mxu1 %v663_v31  ;;  %v65_v15 = vrot.slane %v876_v14, %v64_v13  ;;  %v699_v22 = vpack.c.bf16 %v245_v21, %v244_v20  ;;  %v323_v24 = vld [vmem:[#allocation5 + $0x188] sm:$0xff]  ;;  %v324_v25 = vld [vmem:[#allocation5 + $0x190] sm:$0xff]  ;;  %v325_v27 = vld [vmem:[#allocation5 + $0x198] sm:$0xff]  ;;  %v249_v53 = vrot.slane %v876_v14, %v248_v52 }
  0x38   :  { %665 = vmatprep.subr.bf16.mxu1 %v784_v0  ;;  %v702_v26 = vpack.c.bf16 %v323_v24, %v322_v23  ;;  %v326_v29 = vld [vmem:[#allocation5 + $0x1a0] sm:$0xff]  ;;  %v327_v30 = vld [vmem:[#allocation5 + $0x1a8] sm:$0xff]  ;;  %v329_v32 = vld [vmem:[#allocation5 + $0x1b8] sm:$0xff] }
  0x39   :  { %643 = vmatpush3.bf16.msra.mxu0 %v642_v28  ;;  %v705_v28 = vpack.c.bf16 %v325_v27, %v324_v25  ;;  %v708_v31 = vpack.c.bf16 %v327_v30, %v326_v29  ;;  %v331_v35 = vld [vmem:[#allocation5 + $0x1c8] sm:$0xff]  ;;  %v333_v38 = vld [vmem:[#allocation5 + $0x1d8] sm:$0xff]  ;;  %v336_v49 = vld [vmem:[#allocation5 + $0x1f0] sm:$0xff] }
  0x3a   :  { %644 = vmatprep.subr.bf16.mxu0 %v784_v0  ;;  %v335_v41 = vld [vmem:[#allocation5 + $0x1e8] sm:$0xff]  ;;  %v337_v50 = vld [vmem:[#allocation5 + $0x1f8] sm:$0xff] }
  0x3b   :  { %667 = vmatpush3.bf16.msra.mxu1 %v666_v37  ;;  %v332_v37 = vld [vmem:[#allocation5 + $0x1d0] sm:$0xff] }
  0x3c   :  { %668 = vmatprep.subr.bf16.mxu1 %v784_v0  ;;  %v717_v39 = vpack.c.bf16 %v333_v38, %v332_v37 }
  0x3d   :  { %646 = vmatpush3.bf16.msra.mxu0 %v645_v34  ;;  %v330_v34 = vld [vmem:[#allocation5 + $0x1c0] sm:$0xff] }
  0x3e   :  { %647 = vmatprep.subr.bf16.mxu0 %v784_v0  ;;  %v714_v36 = vpack.c.bf16 %v331_v35, %v330_v34 }
  0x3f   :  { %670 = vmatpush3.bf16.msra.mxu1 %v669_v43  ;;  %v156_v43 = vsub.s32 1, %v870_v12 }
  0x40   :  { %671 = vmatprep.subr.bf16.mxu1 %v784_v0 }
  0x41   :  { %649 = vmatpush3.bf16.msra.mxu0 %v648_v40  ;;  %v334_v40 = vld [vmem:[#allocation5 + $0x1e0] sm:$0xff]  ;;  %v157_v44 = vrot.slane %v876_v14, %v156_v43 }
  0x42   :  { %650 = vmatprep.subr.bf16.mxu0 %v784_v0  ;;  %v720_v42 = vpack.c.bf16 %v335_v41, %v334_v40 }
  0x43   :  { %673 = vmatpush3.bf16.msra.mxu1 %v672_v47 }
  0x44   :  { %674 = vmatprep.subr.bf16.mxu1 %v784_v0 }
  0x45   :  { %652 = vmatpush3.bf16.msra.mxu0 %v651_v46 }
  0x46   :  { %677 = vmatprep.subr.bf16.mxu0 %v784_v0 }
  0x47   :  { %676 = vmatpush3.bf16.msra.mxu1 %v675_v51  ;;  %v723_v51 = vpack.c.bf16 %v337_v50, %v336_v49 }
  0x48   :  { %522 = vmatmul.mubr.f32.vlgmr.msra.gmra.mrb[0].mxu0 %v45_v48  ;;  %701 = vmatprep.subr.bf16.mxu1 %v784_v0 }
  0x49   :  { %591 = vmatprep.mubr.msk.f32.mxu0 %vm786_vm0, %v785_v1  ;;  %679 = vmatpush3.bf16.msra.mxu0 %v678_v55 }
  0x4a   :  { %680 = vmatprep.subr.bf16.mxu0 %v784_v0 }
  0x4d   :  { %682 = vmatpush3.bf16.msra.mxu0 %v681_v57  ;;  %v340_v57 = vsub.s32 3, %v870_v12 }
  0x4e   :  { %683 = vmatprep.subr.bf16.mxu0 %v784_v0 }
  0x4f   :  { %v341_v58 = vrot.slane %v876_v14, %v340_v57 }
  0x51   :  { %685 = vmatpush3.bf16.msra.mxu0 %v684_v60 }
  0x52   :  { %686 = vmatprep.subr.bf16.mxu0 %v784_v0 }
  0x55   :  { %688 = vmatpush3.bf16.msra.mxu0 %v687_v63 }
  0x56   :  { %689 = vmatprep.subr.bf16.mxu0 %v784_v0 }
  0x59   :  { %691 = vmatpush3.bf16.msra.mxu0 %v690_v4 }
  0x5a   :  { %692 = vmatprep.subr.bf16.mxu0 %v784_v0 }
  0x5d   :  { %694 = vmatpush3.bf16.msra.mxu0 %v693_v7 }
  0x5e   :  { %695 = vmatprep.subr.bf16.mxu0 %v784_v0 }
  0x61   :  { %697 = vmatpush3.bf16.msra.mxu0 %v696_v10 }
  0x62   :  { %698 = vmatprep.subr.bf16.mxu0 %v784_v0 }
  0x65   :  { %700 = vmatpush3.bf16.msra.mxu0 %v699_v22 }
 0x11b   :  { %v132_v16 = vpop.f32.mrb[0].mxu0 }
 0x11c   :  { %v133_v17 = vadd.f32 %v132_v16, %v65_v15  ;;  %v523_v18 = vpop.f32.mrb[1].mxu0 }
 0x11e   :  { %v136_v19 = vmax.f32 %v133_v17, 0.0 }
 0x120   :  { %557 = vmatmul.mubr.f32.vlgmr.msra.gmra.mrb[0].mxu1 %v136_v19 }
 0x121   :  { %626 = vmatprep.mubr.msk.f32.mxu1 %vm786_vm0, %v785_v1  ;;  %703 = vmatpush3.bf16.msra.mxu1 %v702_v26  ;;  %v328_v1 = vld [vmem:[#allocation5 + $0x1b0] sm:$0xff] }
 0x122   :  { %704 = vmatprep.subr.bf16.mxu1 %v784_v0  ;;  %v711_v33 = vpack.c.bf16 %v329_v32, %v328_v1 }
 0x125   :  { %706 = vmatpush3.bf16.msra.mxu1 %v705_v28 }
 0x126   :  { %707 = vmatprep.subr.bf16.mxu1 %v784_v0 }
 0x129   :  { %709 = vmatpush3.bf16.msra.mxu1 %v708_v31 }
 0x12a   :  { %710 = vmatprep.subr.bf16.mxu1 %v784_v0 }
 0x12d   :  { %712 = vmatpush3.bf16.msra.mxu1 %v711_v33 }
 0x12e   :  { %713 = vmatprep.subr.bf16.mxu1 %v784_v0 }
 0x131   :  { %715 = vmatpush3.bf16.msra.mxu1 %v714_v36 }
 0x132   :  { %716 = vmatprep.subr.bf16.mxu1 %v784_v0 }
 0x135   :  { %718 = vmatpush3.bf16.msra.mxu1 %v717_v39 }
 0x136   :  { %719 = vmatprep.subr.bf16.mxu1 %v784_v0 }
 0x139   :  { %721 = vmatpush3.bf16.msra.mxu1 %v720_v42 }
 0x13a   :  { %722 = vmatprep.subr.bf16.mxu1 %v784_v0 }
 0x13d   :  { %724 = vmatpush3.bf16.msra.mxu1 %v723_v51 }
 0x1f3   :  { %v224_v45 = vpop.f32.mrb[0].mxu1 }
 0x1f4   :  { %v225_v46 = vadd.f32 %v224_v45, %v157_v44  ;;  %v558_v47 = vpop.f32.mrb[1].mxu1 }
 0x1f6   :  { %v228_v48 = vmax.f32 %v225_v46, 0.0 }
 0x1f8   :  { %592 = vmatmul.mubr.f32.vlgmr.msra.gmra.mrb[2].mxu0 %v228_v48 }
 0x2cb   :  { %v316_v54 = vpop.f32.mrb[2].mxu0 }
 0x2cc   :  { %v317_v55 = vadd.f32 %v316_v54, %v249_v53  ;;  %v593_v0 = vpop.f32.mrb[3].mxu0 }
 0x2ce   :  { %v320_v56 = vmax.f32 %v317_v55, 0.0 }
 0x2d0   :  { %627 = vmatmul.mubr.f32.vlgmr.msra.gmra.mrb[2].mxu1 %v320_v56 }
 0x3a3   :  { %v408_v59 = vpop.f32.mrb[2].mxu1 }
 0x3a4   :  { %v409_v60 = vadd.f32 %v408_v59, %v341_v58  ;;  %v628_v61 = vpop.f32.mrb[3].mxu1 }
 0x3a6   :  { %v412_v62 = vmax.f32 %v409_v60, 0.0 }
 0x3a8   :  { %414 = vst.msk [vmem:[%s900_s3] sm:$0xff] %vm413_vm2, %v412_v62 }
 0x3a9   :  { %419 = vsyncpa [#allocation4], 1 }
 0x3aa   :  { %420 = vsyncpa [#allocation6], 1 }

</bundles_post_ra>
